<compile_context>
chip_gen: v5e
topology: v5e:2x2
jax: 0.10.0
libtpu: 0.0.40
codegen_flags: <defaults>
</compile_context>

<pallas_src>
import functools

import jax
import jax.numpy as jnp
from jax.experimental import pallas as pl
from jax.experimental.pallas import tpu as pltpu


def _round_up(x: int, m: int) -> int:
    return ((x + m - 1) // m) * m


def _policy_kernel(s_ref, w1_ref, b1_ref, w2_ref, b2_ref, w3_ref, b3_ref,
                   scale_ref, bias_ref, out_ref):
    # State tile is streamed as f32 (unpadded feature dim); cast to bf16 only
    # for the MXU. All bias/relu/tanh/affine math stays in f32 on the VPU/EUP.
    x = s_ref[...].astype(jnp.bfloat16)                                   # (TILE_B, IN_P)
    h = jnp.dot(x, w1_ref[...], preferred_element_type=jnp.float32) + b1_ref[...]
    h = jnp.maximum(h, 0.0)
    h = jnp.dot(h.astype(jnp.bfloat16), w2_ref[...],
                preferred_element_type=jnp.float32) + b2_ref[...]
    h = jnp.maximum(h, 0.0)
    m = jnp.dot(h.astype(jnp.bfloat16), w3_ref[...],
                preferred_element_type=jnp.float32) + b3_ref[...]
    m = jnp.tanh(m) * scale_ref[...] + bias_ref[...]
    out_ref[...] = m.astype(out_ref.dtype)                                # bf16 writeback


def prepare_params(params):
    """One-time weight padding + bf16 cast. Call once; reuse across forward calls."""
    num_inputs, hidden = params["w1"].shape
    num_actions = params["w3"].shape[1]
    IN_P = _round_up(num_inputs, 8)       # f32 sublane multiple (state streamed as f32)
    H_P = _round_up(hidden, 128)
    A_P = _round_up(num_actions, 128)
    bf = jnp.bfloat16

    def pad2(a, rows, cols, dtype):
        a = jnp.asarray(a, dtype)
        return jnp.pad(a, ((0, rows - a.shape[0]), (0, cols - a.shape[1])))

    def act_row(v):
        # Accepts scalar (as in the torch module), (1,) or per-action (A,) buffers.
        v = jnp.asarray(v, jnp.float32).reshape(-1)
        if v.shape[0] == 1:
            v = jnp.broadcast_to(v, (num_actions,))
        return jnp.pad(v, (0, A_P - num_actions)).reshape(1, A_P)

    prepped = {
        "w1": pad2(params["w1"], IN_P, H_P, bf),
        "b1": pad2(jnp.reshape(params["b1"], (1, -1)), 1, H_P, jnp.float32),
        "w2": pad2(params["w2"], H_P, H_P, bf),
        "b2": pad2(jnp.reshape(params["b2"], (1, -1)), 1, H_P, jnp.float32),
        "w3": pad2(params["w3"], H_P, A_P, bf),
        "b3": pad2(jnp.reshape(params["b3"], (1, -1)), 1, A_P, jnp.float32),
        "scale": act_row(params["action_scale"]),
        "bias": act_row(params["action_bias"]),
    }
    meta = {"num_inputs": num_inputs, "num_actions": num_actions,
            "in_p": IN_P, "h_p": H_P, "a_p": A_P}
    return jax.device_put(prepped), meta


@functools.partial(jax.jit, static_argnames=("num_actions", "tile_b"))
def _forward_impl(state, prepped, *, num_actions, tile_b):
    B, num_inputs = state.shape
    IN_P, H_P = prepped["w1"].shape
    A_P = prepped["w3"].shape[1]

    # Batch tiling: 16-aligned (bf16 sublane packing for the output tile) and
    # capped at ~half the batch so the grid has >= 2 steps (v7x megacore).
    B16 = _round_up(B, 16)
    TILE_B = _round_up(min(tile_b, max(16, B16 // 2)), 16)
    B_P = _round_up(B, TILE_B)
    n_tiles = B_P // TILE_B

    # Pad batch to a whole number of tiles; feature dim only to the f32 sublane
    # multiple (usually a no-op). Padded rows/cols contribute exactly zero.
    x = jnp.pad(state.astype(jnp.float32), ((0, B_P - B), (0, IN_P - num_inputs)))

    # VMEM budget from the actual footprint: double-buffered streamed tiles +
    # resident weights + f32 intermediate scratch, with headroom. Floor at the
    # 16 MiB v5e default, cap well under v7x's 64 MiB physical VMEM.
    resident = 2 * 2 * (IN_P * H_P + H_P * H_P + H_P * A_P)      # bf16 weights, 2 bufs
    resident += 2 * 4 * (2 * H_P + 3 * A_P)                      # f32 bias/scale rows
    streamed = 2 * TILE_B * (IN_P * 4 + A_P * 2)                 # state in + bf16 out, 2 bufs
    scratch = 4 * TILE_B * H_P * 4                               # f32 h + cast temps
    vmem_limit = int(min(max(1.5 * (resident + streamed + scratch) + (4 << 20),
                             16 << 20), 48 << 20))

    cost = pl.CostEstimate(
        flops=int(2 * B_P * (IN_P * H_P + H_P * H_P + H_P * A_P)),
        transcendentals=int(B_P * A_P),
        bytes_accessed=int(B_P * IN_P * 4
                           + 2 * (IN_P * H_P + H_P * H_P + H_P * A_P)
                           + 4 * (2 * H_P + 3 * A_P)
                           + B_P * A_P * 2),
    )

    grid_spec = pltpu.PrefetchScalarGridSpec(
        num_scalar_prefetch=0,
        grid=(n_tiles,),
        in_specs=[
            pl.BlockSpec((TILE_B, IN_P), lambda i: (i, 0)),   # state tile (streamed)
            pl.BlockSpec((IN_P, H_P),    lambda i: (0, 0)),   # W1 (VMEM-resident)
            pl.BlockSpec((1, H_P),       lambda i: (0, 0)),   # b1
            pl.BlockSpec((H_P, H_P),     lambda i: (0, 0)),   # W2
            pl.BlockSpec((1, H_P),       lambda i: (0, 0)),   # b2
            pl.BlockSpec((H_P, A_P),     lambda i: (0, 0)),   # W3
            pl.BlockSpec((1, A_P),       lambda i: (0, 0)),   # b3
            pl.BlockSpec((1, A_P),       lambda i: (0, 0)),   # action_scale row
            pl.BlockSpec((1, A_P),       lambda i: (0, 0)),   # action_bias row
        ],
        out_specs=pl.BlockSpec((TILE_B, A_P), lambda i: (i, 0)),
    )

    out_padded = pl.pallas_call(
        _policy_kernel,
        out_shape=jax.ShapeDtypeStruct((B_P, A_P), jnp.bfloat16),
        grid_spec=grid_spec,
        compiler_params=pltpu.CompilerParams(
            dimension_semantics=("parallel",),    # shard batch tiles across TCs (v7x)
            vmem_limit_bytes=vmem_limit,
        ),
        cost_estimate=cost,
    )(x, prepped["w1"], prepped["b1"], prepped["w2"], prepped["b2"],
      prepped["w3"], prepped["b3"], prepped["scale"], prepped["bias"])

    # Tiny (B, A) slice; cast the bf16 writeback to f32 for downstream RL code.
    return out_padded[:B, :num_actions].astype(jnp.float32)


def deterministic_policy_forward(state, prepped, meta, *, tile_b=512):
    """Fused policy forward. `tile_b` is the knob to sweep (512-1024 is a good range)."""
    return _forward_impl(state, prepped,
                         num_actions=meta["num_actions"], tile_b=tile_b)


def init_params(key, num_inputs, num_actions, hidden_size, init_w=0.003):
    """nn.Linear-style init + uniform(-init_w, init_w) for mean_linear.
    Weights stored as [in, out] (transposed vs. torch)."""
    k1, k2, k3, k4, k5, k6 = jax.random.split(key, 6)

    def linear_init(kw, kb, fan_in, fan_out):
        bound = 1.0 / jnp.sqrt(fan_in)
        w = jax.random.uniform(kw, (fan_in, fan_out), jnp.float32, -bound, bound)
        b = jax.random.uniform(kb, (1, fan_out), jnp.float32, -bound, bound)
        return w, b

    w1, b1 = linear_init(k1, k2, num_inputs, hidden_size)
    w2, b2 = linear_init(k3, k4, hidden_size, hidden_size)
    w3 = jax.random.uniform(k5, (hidden_size, num_actions), jnp.float32, -init_w, init_w)
    b3 = jax.random.uniform(k6, (1, num_actions), jnp.float32, -init_w, init_w)

    return {
        "w1": w1, "b1": b1,
        "w2": w2, "b2": b2,
        "w3": w3, "b3": b3,
        # Matches the torch module's scalar buffers; per-action vectors also supported.
        "action_scale": jnp.array(1.0, dtype=jnp.float32),
        "action_bias": jnp.array(0.0, dtype=jnp.float32),
    }


def reference_forward(state, params):
    """Precision-matched JAX reference (bf16 matmuls, f32 accumulate/activations)."""
    bf = jnp.bfloat16
    h = jnp.dot(state.astype(bf), params["w1"].astype(bf),
                preferred_element_type=jnp.float32) + params["b1"]
    h = jnp.maximum(h, 0.0)
    h = jnp.dot(h.astype(bf), params["w2"].astype(bf),
                preferred_element_type=jnp.float32) + params["b2"]
    h = jnp.maximum(h, 0.0)
    m = jnp.tanh(jnp.dot(h.astype(bf), params["w3"].astype(bf),
                         preferred_element_type=jnp.float32) + params["b3"])
    return (m * jnp.asarray(params["action_scale"], jnp.float32)
            + jnp.asarray(params["action_bias"], jnp.float32))


if __name__ == "__main__":
    key = jax.random.PRNGKey(0)
    kp, ks = jax.random.split(key)

    batch = 2
    num_inputs = 16
    num_actions = 8
    hidden_size = 32

    params = init_params(kp, num_inputs, num_actions, hidden_size)
    state = jax.random.normal(ks, (batch, num_inputs), dtype=jnp.float32)

    # One-time weight prep (padding + bf16 cast), then the fused forward.
    prepped, meta = prepare_params(params)
    mean = deterministic_policy_forward(state, prepped, meta)
    mean = jax.block_until_ready(mean)

    ref = reference_forward(state, params)
    assert mean.shape == (batch, num_actions)
    assert jnp.allclose(mean, ref, atol=1e-2, rtol=1e-2), (
        f"max abs err {float(jnp.max(jnp.abs(mean - ref)))}")

    # Also exercise per-action action_scale/action_bias (review correctness item).
    params_vec = dict(params)
    params_vec["action_scale"] = jnp.linspace(0.5, 2.0, num_actions).astype(jnp.float32)
    params_vec["action_bias"] = jnp.linspace(-0.25, 0.25, num_actions).astype(jnp.float32)
    prepped_v, meta_v = prepare_params(params_vec)
    mean_v = jax.block_until_ready(deterministic_policy_forward(state, prepped_v, meta_v))
    ref_v = reference_forward(state, params_vec)
    assert jnp.allclose(mean_v, ref_v, atol=2e-2, rtol=2e-2), (
        f"max abs err (vector scale/bias) {float(jnp.max(jnp.abs(mean_v - ref_v)))}")

    print("KERNEL_OK")
</pallas_src>

<mosaic_0001>
module attributes {stable_mosaic.version = 11 : i64} {
  func.func @_policy_kernel(%arg0: i32, %arg1: memref<16x16xf32, #tpu.memory_space<vmem>>, %arg2: memref<16x128xbf16, #tpu.memory_space<vmem>>, %arg3: memref<1x128xf32, #tpu.memory_space<vmem>>, %arg4: memref<128x128xbf16, #tpu.memory_space<vmem>>, %arg5: memref<1x128xf32, #tpu.memory_space<vmem>>, %arg6: memref<128x128xbf16, #tpu.memory_space<vmem>>, %arg7: memref<1x128xf32, #tpu.memory_space<vmem>>, %arg8: memref<1x128xf32, #tpu.memory_space<vmem>>, %arg9: memref<1x128xf32, #tpu.memory_space<vmem>>, %arg10: memref<16x128xbf16, #tpu.memory_space<vmem>>) attributes {dimension_semantics = [#tpu.dimension_semantics<parallel>], iteration_bounds = array<i64: 1>, scalar_prefetch = 0 : i64, scratch_operands = 0 : i64, tpu.core_type = #tpu.core_type<tc>, window_params = [{transform_indices = @transform_0, window_bounds = array<i64: 16, 16>}, {pipeline_mode = #tpu.pipeline_mode<synchronous>, transform_indices = @transform_1, window_bounds = array<i64: 16, 128>}, {pipeline_mode = #tpu.pipeline_mode<synchronous>, transform_indices = @transform_2, window_bounds = array<i64: 1, 128>}, {pipeline_mode = #tpu.pipeline_mode<synchronous>, transform_indices = @transform_3, window_bounds = array<i64: 128, 128>}, {pipeline_mode = #tpu.pipeline_mode<synchronous>, transform_indices = @transform_4, window_bounds = array<i64: 1, 128>}, {pipeline_mode = #tpu.pipeline_mode<synchronous>, transform_indices = @transform_5, window_bounds = array<i64: 128, 128>}, {pipeline_mode = #tpu.pipeline_mode<synchronous>, transform_indices = @transform_6, window_bounds = array<i64: 1, 128>}, {pipeline_mode = #tpu.pipeline_mode<synchronous>, transform_indices = @transform_7, window_bounds = array<i64: 1, 128>}, {pipeline_mode = #tpu.pipeline_mode<synchronous>, transform_indices = @transform_8, window_bounds = array<i64: 1, 128>}, {transform_indices = @transform_9, window_bounds = array<i64: 16, 128>}]} {
    %c0 = arith.constant 0 : index
    %c0_0 = arith.constant 0 : index
    %0 = vector.load %arg1[%c0, %c0_0] : memref<16x16xf32, #tpu.memory_space<vmem>>, vector<16x16xf32>
    %1 = arith.truncf %0 : vector<16x16xf32> to vector<16x16xbf16>
    %c0_1 = arith.constant 0 : index
    %c0_2 = arith.constant 0 : index
    %2 = vector.load %arg2[%c0_1, %c0_2] : memref<16x128xbf16, #tpu.memory_space<vmem>>, vector<16x128xbf16>
    %cst = arith.constant dense<0.000000e+00> : vector<16x128xf32>
    %3 = tpu.matmul %1, %2, %cst {dimension_numbers = #tpu.dot_dimension_numbers<[1], [0], [0], [1], [0, 0, 1, 1], [], []>} : vector<16x16xbf16>, vector<16x128xbf16>, vector<16x128xf32> -> vector<16x128xf32>
    %c0_3 = arith.constant 0 : index
    %c0_4 = arith.constant 0 : index
    %4 = vector.load %arg3[%c0_3, %c0_4] : memref<1x128xf32, #tpu.memory_space<vmem>>, vector<1x128xf32>
    %5 = vector.broadcast %4 : vector<1x128xf32> to vector<16x128xf32>
    %6 = arith.addf %3, %5 : vector<16x128xf32>
    %cst_5 = arith.constant 0.000000e+00 : f32
    %7 = vector.broadcast %cst_5 : f32 to vector<16x128xf32>
    %8 = arith.maximumf %6, %7 : vector<16x128xf32>
    %9 = arith.truncf %8 : vector<16x128xf32> to vector<16x128xbf16>
    %c0_6 = arith.constant 0 : index
    %c0_7 = arith.constant 0 : index
    %10 = vector.load %arg4[%c0_6, %c0_7] : memref<128x128xbf16, #tpu.memory_space<vmem>>, vector<128x128xbf16>
    %cst_8 = arith.constant dense<0.000000e+00> : vector<16x128xf32>
    %11 = tpu.matmul %9, %10, %cst_8 {dimension_numbers = #tpu.dot_dimension_numbers<[1], [0], [0], [1], [0, 0, 1, 1], [], []>} : vector<16x128xbf16>, vector<128x128xbf16>, vector<16x128xf32> -> vector<16x128xf32>
    %c0_9 = arith.constant 0 : index
    %c0_10 = arith.constant 0 : index
    %12 = vector.load %arg5[%c0_9, %c0_10] : memref<1x128xf32, #tpu.memory_space<vmem>>, vector<1x128xf32>
    %13 = vector.broadcast %12 : vector<1x128xf32> to vector<16x128xf32>
    %14 = arith.addf %11, %13 : vector<16x128xf32>
    %cst_11 = arith.constant 0.000000e+00 : f32
    %15 = vector.broadcast %cst_11 : f32 to vector<16x128xf32>
    %16 = arith.maximumf %14, %15 : vector<16x128xf32>
    %17 = arith.truncf %16 : vector<16x128xf32> to vector<16x128xbf16>
    %c0_12 = arith.constant 0 : index
    %c0_13 = arith.constant 0 : index
    %18 = vector.load %arg6[%c0_12, %c0_13] : memref<128x128xbf16, #tpu.memory_space<vmem>>, vector<128x128xbf16>
    %cst_14 = arith.constant dense<0.000000e+00> : vector<16x128xf32>
    %19 = tpu.matmul %17, %18, %cst_14 {dimension_numbers = #tpu.dot_dimension_numbers<[1], [0], [0], [1], [0, 0, 1, 1], [], []>} : vector<16x128xbf16>, vector<128x128xbf16>, vector<16x128xf32> -> vector<16x128xf32>
    %c0_15 = arith.constant 0 : index
    %c0_16 = arith.constant 0 : index
    %20 = vector.load %arg7[%c0_15, %c0_16] : memref<1x128xf32, #tpu.memory_space<vmem>>, vector<1x128xf32>
    %21 = vector.broadcast %20 : vector<1x128xf32> to vector<16x128xf32>
    %22 = arith.addf %19, %21 : vector<16x128xf32>
    %23 = math.tanh %22 : vector<16x128xf32>
    %c0_17 = arith.constant 0 : index
    %c0_18 = arith.constant 0 : index
    %24 = vector.load %arg8[%c0_17, %c0_18] : memref<1x128xf32, #tpu.memory_space<vmem>>, vector<1x128xf32>
    %25 = vector.broadcast %24 : vector<1x128xf32> to vector<16x128xf32>
    %26 = arith.mulf %23, %25 : vector<16x128xf32>
    %c0_19 = arith.constant 0 : index
    %c0_20 = arith.constant 0 : index
    %27 = vector.load %arg9[%c0_19, %c0_20] : memref<1x128xf32, #tpu.memory_space<vmem>>, vector<1x128xf32>
    %28 = vector.broadcast %27 : vector<1x128xf32> to vector<16x128xf32>
    %29 = arith.addf %26, %28 : vector<16x128xf32>
    %30 = arith.truncf %29 : vector<16x128xf32> to vector<16x128xbf16>
    %c0_21 = arith.constant 0 : index
    %c0_22 = arith.constant 0 : index
    %31 = vector.load %arg10[%c0_21, %c0_22] : memref<16x128xbf16, #tpu.memory_space<vmem>>, vector<16x128xbf16>
    tpu.vector_store %arg10[%c0_21, %c0_22], %30 {strides = array<i32>} : memref<16x128xbf16, #tpu.memory_space<vmem>>, vector<16x128xbf16>,
    return
  }
  func.func @transform_0(%arg0: i32) -> (i32, i32) {
    %c0_i32 = arith.constant 0 : i32
    %c0_i32_0 = arith.constant 0 : i32
    return %arg0, %c0_i32 : i32, i32
  }
  func.func @transform_1(%arg0: i32) -> (i32, i32) {
    %c0_i32 = arith.constant 0 : i32
    %c0_i32_0 = arith.constant 0 : i32
    %c0_i32_1 = arith.constant 0 : i32
    return %c0_i32, %c0_i32_0 : i32, i32
  }
  func.func @transform_2(%arg0: i32) -> (i32, i32) {
    %c0_i32 = arith.constant 0 : i32
    %c0_i32_0 = arith.constant 0 : i32
    %c0_i32_1 = arith.constant 0 : i32
    return %c0_i32, %c0_i32_0 : i32, i32
  }
  func.func @transform_3(%arg0: i32) -> (i32, i32) {
    %c0_i32 = arith.constant 0 : i32
    %c0_i32_0 = arith.constant 0 : i32
    %c0_i32_1 = arith.constant 0 : i32
    return %c0_i32, %c0_i32_0 : i32, i32
  }
  func.func @transform_4(%arg0: i32) -> (i32, i32) {
    %c0_i32 = arith.constant 0 : i32
    %c0_i32_0 = arith.constant 0 : i32
    %c0_i32_1 = arith.constant 0 : i32
    return %c0_i32, %c0_i32_0 : i32, i32
  }
  func.func @transform_5(%arg0: i32) -> (i32, i32) {
    %c0_i32 = arith.constant 0 : i32
    %c0_i32_0 = arith.constant 0 : i32
    %c0_i32_1 = arith.constant 0 : i32
    return %c0_i32, %c0_i32_0 : i32, i32
  }
  func.func @transform_6(%arg0: i32) -> (i32, i32) {
    %c0_i32 = arith.constant 0 : i32
    %c0_i32_0 = arith.constant 0 : i32
    %c0_i32_1 = arith.constant 0 : i32
    return %c0_i32, %c0_i32_0 : i32, i32
  }
  func.func @transform_7(%arg0: i32) -> (i32, i32) {
    %c0_i32 = arith.constant 0 : i32
    %c0_i32_0 = arith.constant 0 : i32
    %c0_i32_1 = arith.constant 0 : i32
    return %c0_i32, %c0_i32_0 : i32, i32
  }
  func.func @transform_8(%arg0: i32) -> (i32, i32) {
    %c0_i32 = arith.constant 0 : i32
    %c0_i32_0 = arith.constant 0 : i32
    %c0_i32_1 = arith.constant 0 : i32
    return %c0_i32, %c0_i32_0 : i32, i32
  }
  func.func @transform_9(%arg0: i32) -> (i32, i32) {
    %c0_i32 = arith.constant 0 : i32
    %c0_i32_0 = arith.constant 0 : i32
    return %arg0, %c0_i32 : i32, i32
  }
}

</mosaic_0001>

<bundles_post_ra>
// kernel: _forward_impl.1
= control target key start
LH: loop header
LB: loop body
LE: loop exit
PB: predicated region body
PF: predicated region fallthrough
CT: control target
= control target key end

     0   :  { %14 = vsyncpa [#allocation3], 0  ;;  %s535_s0 = inlined_call_operand.vmem [shape: f32[16,16], index: 0, kind: input, shape index: {}]   ;;  %s536_s1 = inlined_call_operand.vmem [shape: bf16[16,128], index: 1, kind: input, shape index: {}]   ;;  %s537_s2 = inlined_call_operand.vmem [shape: f32[1,128], index: 2, kind: input, shape index: {}]   ;;  %s538_s3 = inlined_call_operand.hbm [shape: bf16[128,128], index: 3, kind: input, shape index: {}]   ;;  %s539_s4 = inlined_call_operand.vmem [shape: f32[1,128], index: 4, kind: input, shape index: {}]   ;;  %s540_s5 = inlined_call_operand.hbm [shape: bf16[128,128], index: 5, kind: input, shape index: {}]   ;;  %s541_s6 = inlined_call_operand.vmem [shape: f32[1,128], index: 6, kind: input, shape index: {}]   ;;  %s542_s7 = inlined_call_operand.vmem [shape: f32[1,128], index: 7, kind: input, shape index: {}]   ;;  %s543_s8 = inlined_call_operand.vmem [shape: f32[1,128], index: 8, kind: input, shape index: {}]   ;;  %s544_s9 = inlined_call_operand.vmem [shape: bf16[16,128], index: 9, kind: output, shape index: {}]  }
   0x1   :  { %s26_s11 = sshll.u32 %s538_s3, 4  ;;  %s27_s11 = int_to_ptr.hbm [resolvable:$true] %s26_s11 }
   0x2   :  { %15 = vsyncpa [#allocation5], 0  ;;  %s448_s12 = smov [#allocation2]   ;;  %s41_s16 = sshll.u32 %s540_s5, 4  ;;  %s42_s16 = int_to_ptr.hbm [resolvable:$true] %s41_s16 }
   0x3   :  { %s28_s13 = sshll.u32 %s448_s12, 4  ;;  %s449_s17 = smov 64   ;;  %s29_s13 = int_to_ptr.vmem [resolvable:$true] %s28_s13 }
   0x4   :  { %s450_s18 = smov 4   ;;  %s451_s19 = smov [#allocation4]  }
   0x5   :  { %34 = dma.hbm_to_vmem [thread:$0]  %s27_s11, 1024, %s29_s13, [#allocation3], %s449_s17, %s449_s17, %s450_s18  }
   0x6   :  { %s43_s20 = sshll.u32 %s451_s19, 4  ;;  %s44_s20 = int_to_ptr.vmem [resolvable:$true] %s43_s20 }
   0x7   :  { %49 = dma.hbm_to_vmem [thread:$0]  %s42_s16, 1024, %s44_s20, [#allocation5], %s449_s17, %s449_s17, %s450_s18  }
   0x8   :  { %444 = dma.done.wait [#allocation3], 1024  }
   0x9   :  { %445 = vsyncadd [#allocation3], 4294966272 }
   0xa   :  { %446 = dma.done.wait [#allocation5], 1024  }
   0xb   :  { %447 = vsyncadd [#allocation5], 4294966272  ;;  %v361_v0 = vld [vmem:[%s536_s1] sm:$0xff]  ;;  %v66_v2 = vld [vmem:[%s535_s0 + $0x8] sm:$0xff]  ;;  %vm80_vm0 = vcmask 130048  }
   0xc   :  { %v65_v1 = vld [vmem:[%s535_s0] sm:$0xff]  ;;  %v369_v4 = vld [vmem:[#allocation2 + $0x38] sm:$0xff]  ;;  %91 = vmatpush.bf16.msra.mxu0 %v361_v0  ;;  %v368_v5 = vld [vmem:[#allocation2 + $0x30] sm:$0xff] }
   0xd   :  { %v67_v3 = vpack.c.bf16 %v66_v2, %v65_v1  ;;  %169 = vmatpush.bf16.msra.mxu1 %v369_v4  ;;  %v367_v6 = vld [vmem:[#allocation2 + $0x28] sm:$0xff]  ;;  %v366_v7 = vld [vmem:[#allocation2 + $0x20] sm:$0xff]  ;;  %v365_v8 = vld [vmem:[#allocation2 + $0x18] sm:$0xff] }
   0xe   :  { %v364_v9 = vld [vmem:[#allocation2 + $0x10] sm:$0xff]  ;;  %v363_v10 = vld [vmem:[#allocation2 + $0x8] sm:$0xff]  ;;  %v362_v11 = vld [vmem:[#allocation2] sm:$0xff] }
   0xf   :  { %296 = vmatmul.msk.bf16.vlgmr.msra.gmra.mxu0 %vm80_vm0, %v67_v3  ;;  %v377_v12 = vld [vmem:[#allocation4 + $0x38] sm:$0xff]  ;;  %v376_v13 = vld [vmem:[#allocation4 + $0x30] sm:$0xff]  ;;  %v375_v14 = vld [vmem:[#allocation4 + $0x28] sm:$0xff] }
  0x10   :  { %254 = vmatpush.bf16.msra.mxu2 %v377_v12  ;;  %v374_v15 = vld [vmem:[#allocation4 + $0x20] sm:$0xff]  ;;  %v373_v24 = vld [vmem:[#allocation4 + $0x18] sm:$0xff]  ;;  %v372_v25 = vld [vmem:[#allocation4 + $0x10] sm:$0xff] }
  0x11   :  { %170 = vmatpush.bf16.msra.mxu1 %v368_v5  ;;  %v387_v17 = vld [vmem:[%s537_s2] ss:$0 sm:$0xff]  ;;  %v371_v26 = vld [vmem:[#allocation4 + $0x8] sm:$0xff] }
  0x12   :  { %v370_v27 = vld [vmem:[#allocation4] sm:$0xff] }
  0x13   :  { %v388_v29 = vld [vmem:[%s539_s4] ss:$0 sm:$0xff] }
  0x14   :  { %255 = vmatpush.bf16.msra.mxu2 %v376_v13  ;;  %v389_v36 = vld [vmem:[%s541_s6] ss:$0 sm:$0xff] }
  0x15   :  { %171 = vmatpush.bf16.msra.mxu1 %v367_v6  ;;  %v390_v41 = vld [vmem:[%s542_s7] ss:$0 sm:$0xff] }
  0x16   :  { %v391_v44 = vld [vmem:[%s543_s8] ss:$0 sm:$0xff] }
  0x18   :  { %256 = vmatpush.bf16.msra.mxu2 %v375_v14 }
  0x19   :  { %172 = vmatpush.bf16.msra.mxu1 %v366_v7 }
  0x1c   :  { %257 = vmatpush.bf16.msra.mxu2 %v374_v15 }
  0x1d   :  { %173 = vmatpush.bf16.msra.mxu1 %v365_v8 }
  0x20   :  { %258 = vmatpush.bf16.msra.mxu2 %v373_v24 }
  0x21   :  { %174 = vmatpush.bf16.msra.mxu1 %v364_v9 }
  0x24   :  { %259 = vmatpush.bf16.msra.mxu2 %v372_v25 }
  0x25   :  { %175 = vmatpush.bf16.msra.mxu1 %v363_v10 }
  0x28   :  { %260 = vmatpush.bf16.msra.mxu2 %v371_v26 }
  0x29   :  { %176 = vmatpush.bf16.msra.mxu1 %v362_v11 }
  0x2c   :  { %261 = vmatpush.bf16.msra.mxu2 %v370_v27 }
  0x8c   :  { %v93_v16 = vpop.f32.mrf.mxu0 }
  0x8d   :  { %v94_v18 = vadd.f32 %v387_v17, %v93_v16 }
  0x8f   :  { %v98_v21 = vmax.f32 %v94_v18, 0.0 }
  0x94   :  { %v95_v19 = vpop.f32.mrf.mxu0 }
  0x95   :  { %v96_v20 = vadd.f32 %v387_v17, %v95_v19 }
  0x97   :  { %v99_v22 = vmax.f32 %v96_v20, 0.0 }
  0x99   :  { %v100_v23 = vpack.c.bf16 %v99_v22, %v98_v21 }
  0x9b   :  { %177 = vmatmul.bf16.vlgmr.msra.gmra.mxu1 %v100_v23 }
 0x118   :  { %v178_v28 = vpop.f32.mrf.mxu1 }
 0x119   :  { %v179_v30 = vadd.f32 %v388_v29, %v178_v28 }
 0x11b   :  { %v183_v33 = vmax.f32 %v179_v30, 0.0 }
 0x120   :  { %v180_v31 = vpop.f32.mrf.mxu1 }
 0x121   :  { %v181_v32 = vadd.f32 %v388_v29, %v180_v31 }
 0x123   :  { %v184_v34 = vmax.f32 %v181_v32, 0.0 }
 0x125   :  { %v185_v35 = vpack.c.bf16 %v184_v34, %v183_v33 }
 0x127   :  { %262 = vmatmul.bf16.vlgmr.msra.gmra.mxu2 %v185_v35 }
 0x1aa   :  { %v263_v37 = vpop.f32.mrf.mxu2 }
 0x1ab   :  { %v264_v38 = vadd.f32 %v389_v36, %v263_v37 }
 0x1ad   :  { %392 = vtanh.f32 %v264_v38 }
 0x1b2   :  { %v265_v39 = vpop.f32.mrf.mxu2 }
 0x1b3   :  { %v266_v40 = vadd.f32 %v389_v36, %v265_v39  ;;  %v393_v42 = vpop.eup %392 }
 0x1b4   :  { %v274_v43 = vmul.f32 %v393_v42, %v390_v41 }
 0x1b5   :  { %394 = vtanh.f32 %v266_v40 }
 0x1b6   :  { %v280_v47 = vadd.f32 %v391_v44, %v274_v43 }
 0x1bb   :  { %v395_v45 = vpop.eup %394 }
 0x1bc   :  { %v275_v46 = vmul.f32 %v395_v45, %v390_v41 }
 0x1be   :  { %v281_v48 = vadd.f32 %v391_v44, %v275_v46 }
 0x1c0   :  { %v381_v49 = vpack.c.bf16 %v281_v48, %v280_v47 }
 0x1c2   :  { %382 = vst [vmem:[%s544_s9] sm:$0xff] %v381_v49  }
 0x1c3   :  { %290 = vsyncpa [#allocation3], 1 }
 0x1c4   :  { %291 = vsyncpa [#allocation5], 1 }

</bundles_post_ra>
